<compile_context>
chip_gen: v7x
topology: tpu7x:2x2x1
jax: 0.10.0
libtpu: 0.0.40
codegen_flags: <defaults>
</compile_context>

<pallas_src>
import functools

import jax
import jax.numpy as jnp
from jax.experimental import pallas as pl
from jax.experimental.pallas import tpu as pltpu


def readout_kernel(feat_ref, emb_ref, w1a_ref, w1b_ref, b1_ref,
                   w2_ref, b2_ref, w3_ref, b3_ref,
                   out_ref, acc_ref, *, n_rows, block_n, ragged):
    i = pl.program_id(0)
    last = pl.num_programs(0) - 1

    @pl.when(i == 0)
    def _init():
        acc_ref[...] = jnp.zeros_like(acc_ref)

    cdt = w2_ref.dtype  # matmul-input dtype (f32 or bf16); accumulation is f32

    # layer1 (two dots: pre-split W1 over the two node streams) + ReLU, f32.
    h = (jnp.dot(feat_ref[...], w1a_ref[...], preferred_element_type=jnp.float32)
         + jnp.dot(emb_ref[...], w1b_ref[...], preferred_element_type=jnp.float32)
         + b1_ref[...])
    h = jnp.maximum(h, 0.0)

    # layer2 + ReLU, f32 accumulate / epilogue.
    g = jnp.dot(h.astype(cdt), w2_ref[...],
                preferred_element_type=jnp.float32) + b2_ref[...]
    g = jnp.maximum(g, 0.0)

    def _finalize():
        # Mean over nodes, then the tiny output linear, once.
        mean_g = acc_ref[...] / jnp.float32(n_rows)
        out_ref[...] = (jnp.dot(mean_g.astype(cdt), w3_ref[...],
                                preferred_element_type=jnp.float32)
                        + b3_ref[...]).astype(out_ref.dtype)

    if ragged:
        # Only the last tile can contain out-of-bounds rows -> mask only there.
        @pl.when(i != last)
        def _accumulate():
            acc_ref[...] += jnp.sum(g, axis=0, keepdims=True)

        @pl.when(i == last)
        def _accumulate_masked_and_finish():
            row = i * block_n + jax.lax.broadcasted_iota(jnp.int32, g.shape, 0)
            gm = jnp.where(row < n_rows, g, 0.0)
            acc_ref[...] += jnp.sum(gm, axis=0, keepdims=True)
            _finalize()
    else:
        acc_ref[...] += jnp.sum(g, axis=0, keepdims=True)

        @pl.when(i == last)
        def _finish():
            _finalize()


def readout_forward(node_features, node_embeddings, params, *,
                    block_n=None, compute_dtype=jnp.float32):
    """Pallas forward of the Readout module.  Returns (num_cats,) f32 logits."""
    w1, b1, w2, b2, w3, b3 = params

    n, attr_dim = node_features.shape
    n2, emb_dim = node_embeddings.shape
    assert n == n2, "node_features / node_embeddings row mismatch"
    hidden_dim = w1.shape[1]
    output_dim = w2.shape[1]
    num_cats = w3.shape[1]

    # Pre-split W1 so the kernel consumes the two node streams directly
    # (avoids materializing the concatenated (N, attr+emb) array in HBM).
    w1a, w1b = w1[:attr_dim], w1[attr_dim:]

    cdt = jax.dtypes.canonicalize_dtype(compute_dtype)
    feat = node_features.astype(cdt)
    emb = node_embeddings.astype(cdt)
    w1a = w1a.astype(cdt)
    w1b = w1b.astype(cdt)
    w2c = w2.astype(cdt)
    w3c = w3.astype(cdt)
    b1f = b1.astype(jnp.float32)
    b2f = b2.astype(jnp.float32)
    b3f = b3.astype(jnp.float32)

    # Node tile: big (amortizes per-step overhead), multiple of the sublane
    # packing (8 rows f32 / 16 rows bf16).  If one tile covers all nodes,
    # use block_n == n exactly (block dim == full array dim is always legal).
    align = 8 * (4 // cdt.itemsize)
    if block_n is None:
        block_n = 2048
    block_n = max(align, (block_n // align) * align)
    if block_n >= n:
        block_n = n
    grid = (pl.cdiv(n, block_n),)
    ragged = (n % block_n) != 0

    def const_spec(shape):
        # Constant block index -> loaded once, resident across all grid steps.
        return pl.BlockSpec(shape, lambda i: (0, 0))

    kernel = functools.partial(readout_kernel, n_rows=n, block_n=block_n,
                               ragged=ragged)

    out = pl.pallas_call(
        kernel,
        out_shape=jax.ShapeDtypeStruct((1, num_cats), jnp.float32),
        grid_spec=pltpu.PrefetchScalarGridSpec(
            num_scalar_prefetch=0,
            grid=grid,
            in_specs=[
                pl.BlockSpec((block_n, attr_dim), lambda i: (i, 0)),  # features
                pl.BlockSpec((block_n, emb_dim), lambda i: (i, 0)),   # embeddings
                const_spec(w1a.shape), const_spec(w1b.shape), const_spec(b1f.shape),
                const_spec(w2c.shape), const_spec(b2f.shape),
                const_spec(w3c.shape), const_spec(b3f.shape),
            ],
            out_specs=pl.BlockSpec((1, num_cats), lambda i: (0, 0)),
            scratch_shapes=[pltpu.VMEM((1, output_dim), jnp.float32)],
        ),
        compiler_params=pltpu.CompilerParams(
            # The node axis is a reduction into the resident accumulator.
            dimension_semantics=("arbitrary",)),
    )(feat, emb, w1a, w1b, b1f, w2c, b2f, w3c, b3f)
    return out[0]  # (num_cats,) to match torch.mean(..., dim=0)


def init_params(key, attr_dim, embedding_dim, hidden_dim, output_dim, num_cats):
    ks = jax.random.split(key, 6)
    scale = 0.1
    w1 = scale * jax.random.normal(ks[0], (attr_dim + embedding_dim, hidden_dim), jnp.float32)
    b1 = scale * jax.random.normal(ks[1], (1, hidden_dim), jnp.float32)
    w2 = scale * jax.random.normal(ks[2], (hidden_dim, output_dim), jnp.float32)
    b2 = scale * jax.random.normal(ks[3], (1, output_dim), jnp.float32)
    w3 = scale * jax.random.normal(ks[4], (output_dim, num_cats), jnp.float32)
    b3 = scale * jax.random.normal(ks[5], (1, num_cats), jnp.float32)
    return (w1, b1, w2, b2, w3, b3)


def readout_ref(node_features, node_embeddings, params):
    # Pure-JAX reference mirroring the PyTorch forward exactly.
    w1, b1, w2, b2, w3, b3 = params
    combined = jnp.concatenate([node_features, node_embeddings], axis=1)
    h = jax.nn.relu(combined @ w1 + b1)
    g = jax.nn.relu(h @ w2 + b2)
    return jnp.mean(g @ w3 + b3, axis=0)


if __name__ == "__main__":
    attr_dim = 16
    embedding_dim = 32
    hidden_dim = 64
    output_dim = 32
    num_cats = 8

    key = jax.random.PRNGKey(0)
    k_feat, k_emb, k_param, k_feat2, k_emb2 = jax.random.split(key, 5)
    params = init_params(k_param, attr_dim, embedding_dim, hidden_dim,
                         output_dim, num_cats)

    # Case 1: small molecule graph (N=10) -> single full-dim tile, f32 exact.
    N = 10
    node_features = jax.random.normal(k_feat, (N, attr_dim), jnp.float32)
    node_embeddings = jax.random.normal(k_emb, (N, embedding_dim), jnp.float32)
    logits = jax.block_until_ready(
        readout_forward(node_features, node_embeddings, params))
    ref = readout_ref(node_features, node_embeddings, params)
    assert logits.shape == (num_cats,)
    assert jnp.allclose(logits, ref, atol=1e-5, rtol=1e-5), (logits, ref)

    # Case 2: N=1000, default tile (single big tile, no mask), f32.
    N2 = 1000
    nf2 = jax.random.normal(k_feat2, (N2, attr_dim), jnp.float32)
    ne2 = jax.random.normal(k_emb2, (N2, embedding_dim), jnp.float32)
    logits2 = jax.block_until_ready(readout_forward(nf2, ne2, params))
    ref2 = readout_ref(nf2, ne2, params)
    assert jnp.allclose(logits2, ref2, atol=1e-4, rtol=1e-4), (logits2, ref2)

    # Case 3: N=1000 with block_n=256 -> multi-step grid + ragged last-tile
    # mask (gated to the final step), f32.
    logits3 = jax.block_until_ready(
        readout_forward(nf2, ne2, params, block_n=256))
    assert jnp.allclose(logits3, ref2, atol=1e-4, rtol=1e-4), (logits3, ref2)

    # Case 4: bf16 matmul inputs (f32 accumulation + f32 epilogue), loose check.
    logits4 = jax.block_until_ready(
        readout_forward(nf2, ne2, params, block_n=256,
                        compute_dtype=jnp.bfloat16))
    assert jnp.allclose(logits4, ref2, atol=2e-2, rtol=5e-2), (logits4, ref2)

    print("KERNEL_OK")
</pallas_src>

<mosaic_0001>
module attributes {stable_mosaic.version = 11 : i64} {
  func.func @readout_kernel(%arg0: i32, %arg1: memref<10x16xf32, #tpu.memory_space<vmem>>, %arg2: memref<10x32xf32, #tpu.memory_space<vmem>>, %arg3: memref<16x64xf32, #tpu.memory_space<vmem>>, %arg4: memref<32x64xf32, #tpu.memory_space<vmem>>, %arg5: memref<1x64xf32, #tpu.memory_space<vmem>>, %arg6: memref<64x32xf32, #tpu.memory_space<vmem>>, %arg7: memref<1x32xf32, #tpu.memory_space<vmem>>, %arg8: memref<32x8xf32, #tpu.memory_space<vmem>>, %arg9: memref<1x8xf32, #tpu.memory_space<vmem>>, %arg10: memref<1x8xf32, #tpu.memory_space<vmem>>, %arg11: memref<1x32xf32, #tpu.memory_space<vmem>>) attributes {dimension_semantics = [#tpu.dimension_semantics<arbitrary>], iteration_bounds = array<i64: 1>, scalar_prefetch = 0 : i64, scratch_operands = 1 : i64, tpu.core_type = #tpu.core_type<tc>, window_params = [{transform_indices = @transform_0, window_bounds = array<i64: 10, 16>}, {transform_indices = @transform_1, window_bounds = array<i64: 10, 32>}, {pipeline_mode = #tpu.pipeline_mode<synchronous>, transform_indices = @transform_2, window_bounds = array<i64: 16, 64>}, {pipeline_mode = #tpu.pipeline_mode<synchronous>, transform_indices = @transform_3, window_bounds = array<i64: 32, 64>}, {pipeline_mode = #tpu.pipeline_mode<synchronous>, transform_indices = @transform_4, window_bounds = array<i64: 1, 64>}, {pipeline_mode = #tpu.pipeline_mode<synchronous>, transform_indices = @transform_5, window_bounds = array<i64: 64, 32>}, {pipeline_mode = #tpu.pipeline_mode<synchronous>, transform_indices = @transform_6, window_bounds = array<i64: 1, 32>}, {pipeline_mode = #tpu.pipeline_mode<synchronous>, transform_indices = @transform_7, window_bounds = array<i64: 32, 8>}, {pipeline_mode = #tpu.pipeline_mode<synchronous>, transform_indices = @transform_8, window_bounds = array<i64: 1, 8>}, {pipeline_mode = #tpu.pipeline_mode<synchronous>, transform_indices = @transform_9, window_bounds = array<i64: 1, 8>}]} {
    %c0_i32 = arith.constant 0 : i32
    %0 = arith.cmpi eq, %arg0, %c0_i32 : i32
    %1 = arith.extui %0 : i1 to i32
    %c0_i32_0 = arith.constant 0 : i32
    %2 = arith.cmpi ne, %1, %c0_i32_0 : i32
    scf.if %2 {
      %cst_25 = arith.constant 0.000000e+00 : f32
      %30 = vector.broadcast %cst_25 : f32 to vector<1x32xf32>
      %c0_26 = arith.constant 0 : index
      %c0_27 = arith.constant 0 : index
      %31 = vector.load %arg11[%c0_26, %c0_27] : memref<1x32xf32, #tpu.memory_space<vmem>>, vector<1x32xf32>
      tpu.vector_store %arg11[%c0_26, %c0_27], %30 {strides = array<i32>} : memref<1x32xf32, #tpu.memory_space<vmem>>, vector<1x32xf32>,
    } else {
    }
    %c0 = arith.constant 0 : index
    %c0_1 = arith.constant 0 : index
    %3 = vector.load %arg1[%c0, %c0_1] : memref<10x16xf32, #tpu.memory_space<vmem>>, vector<10x16xf32>
    %c0_2 = arith.constant 0 : index
    %c0_3 = arith.constant 0 : index
    %4 = vector.load %arg3[%c0_2, %c0_3] : memref<16x64xf32, #tpu.memory_space<vmem>>, vector<16x64xf32>
    %cst = arith.constant dense<0.000000e+00> : vector<10x64xf32>
    %5 = tpu.matmul %3, %4, %cst {dimension_numbers = #tpu.dot_dimension_numbers<[1], [0], [0], [1], [0, 0, 1, 1], [], []>} : vector<10x16xf32>, vector<16x64xf32>, vector<10x64xf32> -> vector<10x64xf32>
    %c0_4 = arith.constant 0 : index
    %c0_5 = arith.constant 0 : index
    %6 = vector.load %arg2[%c0_4, %c0_5] : memref<10x32xf32, #tpu.memory_space<vmem>>, vector<10x32xf32>
    %c0_6 = arith.constant 0 : index
    %c0_7 = arith.constant 0 : index
    %7 = vector.load %arg4[%c0_6, %c0_7] : memref<32x64xf32, #tpu.memory_space<vmem>>, vector<32x64xf32>
    %cst_8 = arith.constant dense<0.000000e+00> : vector<10x64xf32>
    %8 = tpu.matmul %6, %7, %cst_8 {dimension_numbers = #tpu.dot_dimension_numbers<[1], [0], [0], [1], [0, 0, 1, 1], [], []>} : vector<10x32xf32>, vector<32x64xf32>, vector<10x64xf32> -> vector<10x64xf32>
    %9 = arith.addf %5, %8 : vector<10x64xf32>
    %c0_9 = arith.constant 0 : index
    %c0_10 = arith.constant 0 : index
    %10 = vector.load %arg5[%c0_9, %c0_10] : memref<1x64xf32, #tpu.memory_space<vmem>>, vector<1x64xf32>
    %11 = vector.broadcast %10 : vector<1x64xf32> to vector<10x64xf32>
    %12 = arith.addf %9, %11 : vector<10x64xf32>
    %cst_11 = arith.constant 0.000000e+00 : f32
    %13 = vector.broadcast %cst_11 : f32 to vector<10x64xf32>
    %14 = arith.maximumf %12, %13 : vector<10x64xf32>
    %c0_12 = arith.constant 0 : index
    %c0_13 = arith.constant 0 : index
    %15 = vector.load %arg6[%c0_12, %c0_13] : memref<64x32xf32, #tpu.memory_space<vmem>>, vector<64x32xf32>
    %cst_14 = arith.constant dense<0.000000e+00> : vector<10x32xf32>
    %16 = tpu.matmul %14, %15, %cst_14 {dimension_numbers = #tpu.dot_dimension_numbers<[1], [0], [0], [1], [0, 0, 1, 1], [], []>} : vector<10x64xf32>, vector<64x32xf32>, vector<10x32xf32> -> vector<10x32xf32>
    %c0_15 = arith.constant 0 : index
    %c0_16 = arith.constant 0 : index
    %17 = vector.load %arg7[%c0_15, %c0_16] : memref<1x32xf32, #tpu.memory_space<vmem>>, vector<1x32xf32>
    %18 = vector.broadcast %17 : vector<1x32xf32> to vector<10x32xf32>
    %19 = arith.addf %16, %18 : vector<10x32xf32>
    %cst_17 = arith.constant 0.000000e+00 : f32
    %20 = vector.broadcast %cst_17 : f32 to vector<10x32xf32>
    %21 = arith.maximumf %19, %20 : vector<10x32xf32>
    %c0_18 = arith.constant 0 : index
    %c0_19 = arith.constant 0 : index
    %22 = vector.load %arg11[%c0_18, %c0_19] : memref<1x32xf32, #tpu.memory_space<vmem>>, vector<1x32xf32>
    %cst_20 = arith.constant dense<0.000000e+00> : vector<32xf32>
    %23 = vector.multi_reduction <add>, %21, %cst_20 [0] : vector<10x32xf32> to vector<32xf32>
    %24 = vector.shape_cast %23 : vector<32xf32> to vector<1x32xf32>
    %25 = arith.addf %22, %24 : vector<1x32xf32>
    %c0_21 = arith.constant 0 : index
    %c0_22 = arith.constant 0 : index
    %26 = vector.load %arg11[%c0_21, %c0_22] : memref<1x32xf32, #tpu.memory_space<vmem>>, vector<1x32xf32>
    tpu.vector_store %arg11[%c0_21, %c0_22], %25 {strides = array<i32>} : memref<1x32xf32, #tpu.memory_space<vmem>>, vector<1x32xf32>,
    %c0_i32_23 = arith.constant 0 : i32
    %27 = arith.cmpi eq, %arg0, %c0_i32_23 : i32
    %28 = arith.extui %27 : i1 to i32
    %c0_i32_24 = arith.constant 0 : i32
    %29 = arith.cmpi ne, %28, %c0_i32_24 : i32
    scf.if %29 {
      %c0_25 = arith.constant 0 : index
      %c0_26 = arith.constant 0 : index
      %30 = vector.load %arg11[%c0_25, %c0_26] : memref<1x32xf32, #tpu.memory_space<vmem>>, vector<1x32xf32>
      %cst_27 = arith.constant 1.000000e+01 : f32
      %31 = vector.broadcast %cst_27 : f32 to vector<1x32xf32>
      %32 = arith.divf %30, %31 : vector<1x32xf32>
      %c0_28 = arith.constant 0 : index
      %c0_29 = arith.constant 0 : index
      %33 = vector.load %arg8[%c0_28, %c0_29] : memref<32x8xf32, #tpu.memory_space<vmem>>, vector<32x8xf32>
      %cst_30 = arith.constant dense<0.000000e+00> : vector<1x8xf32>
      %34 = tpu.matmul %32, %33, %cst_30 {dimension_numbers = #tpu.dot_dimension_numbers<[1], [0], [0], [1], [0, 0, 1, 1], [], []>} : vector<1x32xf32>, vector<32x8xf32>, vector<1x8xf32> -> vector<1x8xf32>
      %c0_31 = arith.constant 0 : index
      %c0_32 = arith.constant 0 : index
      %35 = vector.load %arg9[%c0_31, %c0_32] : memref<1x8xf32, #tpu.memory_space<vmem>>, vector<1x8xf32>
      %36 = arith.addf %34, %35 : vector<1x8xf32>
      %c0_33 = arith.constant 0 : index
      %c0_34 = arith.constant 0 : index
      %37 = vector.load %arg10[%c0_33, %c0_34] : memref<1x8xf32, #tpu.memory_space<vmem>>, vector<1x8xf32>
      tpu.vector_store %arg10[%c0_33, %c0_34], %36 {strides = array<i32>} : memref<1x8xf32, #tpu.memory_space<vmem>>, vector<1x8xf32>,
    } else {
    }
    return
  }
  func.func @transform_0(%arg0: i32) -> (i32, i32) {
    %c0_i32 = arith.constant 0 : i32
    %c0_i32_0 = arith.constant 0 : i32
    return %arg0, %c0_i32 : i32, i32
  }
  func.func @transform_1(%arg0: i32) -> (i32, i32) {
    %c0_i32 = arith.constant 0 : i32
    %c0_i32_0 = arith.constant 0 : i32
    return %arg0, %c0_i32 : i32, i32
  }
  func.func @transform_2(%arg0: i32) -> (i32, i32) {
    %c0_i32 = arith.constant 0 : i32
    %c0_i32_0 = arith.constant 0 : i32
    %c0_i32_1 = arith.constant 0 : i32
    return %c0_i32, %c0_i32_0 : i32, i32
  }
  func.func @transform_3(%arg0: i32) -> (i32, i32) {
    %c0_i32 = arith.constant 0 : i32
    %c0_i32_0 = arith.constant 0 : i32
    %c0_i32_1 = arith.constant 0 : i32
    return %c0_i32, %c0_i32_0 : i32, i32
  }
  func.func @transform_4(%arg0: i32) -> (i32, i32) {
    %c0_i32 = arith.constant 0 : i32
    %c0_i32_0 = arith.constant 0 : i32
    %c0_i32_1 = arith.constant 0 : i32
    return %c0_i32, %c0_i32_0 : i32, i32
  }
  func.func @transform_5(%arg0: i32) -> (i32, i32) {
    %c0_i32 = arith.constant 0 : i32
    %c0_i32_0 = arith.constant 0 : i32
    %c0_i32_1 = arith.constant 0 : i32
    return %c0_i32, %c0_i32_0 : i32, i32
  }
  func.func @transform_6(%arg0: i32) -> (i32, i32) {
    %c0_i32 = arith.constant 0 : i32
    %c0_i32_0 = arith.constant 0 : i32
    %c0_i32_1 = arith.constant 0 : i32
    return %c0_i32, %c0_i32_0 : i32, i32
  }
  func.func @transform_7(%arg0: i32) -> (i32, i32) {
    %c0_i32 = arith.constant 0 : i32
    %c0_i32_0 = arith.constant 0 : i32
    %c0_i32_1 = arith.constant 0 : i32
    return %c0_i32, %c0_i32_0 : i32, i32
  }
  func.func @transform_8(%arg0: i32) -> (i32, i32) {
    %c0_i32 = arith.constant 0 : i32
    %c0_i32_0 = arith.constant 0 : i32
    %c0_i32_1 = arith.constant 0 : i32
    return %c0_i32, %c0_i32_0 : i32, i32
  }
  func.func @transform_9(%arg0: i32) -> (i32, i32) {
    %c0_i32 = arith.constant 0 : i32
    %c0_i32_0 = arith.constant 0 : i32
    %c0_i32_1 = arith.constant 0 : i32
    return %c0_i32, %c0_i32_0 : i32, i32
  }
}

</mosaic_0001>

<bundles_post_ra>
// kernel: tpu_custom_call.1
= control target key start
LH: loop header
LB: loop body
LE: loop exit
PB: predicated region body
PF: predicated region fallthrough
CT: control target
= control target key end

     0   :  { %vm49_vm0 = vcmask 261120   ;;  %s730_s0 = inlined_call_operand.vmem [shape: f32[10,16], index: 0, kind: input, shape index: {}]   ;;  %s731_s1 = inlined_call_operand.vmem [shape: f32[10,32], index: 1, kind: input, shape index: {}]   ;;  %s732_s2 = inlined_call_operand.vmem [shape: f32[16,64], index: 2, kind: input, shape index: {}]   ;;  %s733_s3 = inlined_call_operand.vmem [shape: f32[32,64], index: 3, kind: input, shape index: {}]   ;;  %s734_s4 = inlined_call_operand.vmem [shape: f32[1,64], index: 4, kind: input, shape index: {}]   ;;  %s735_s5 = inlined_call_operand.vmem [shape: f32[64,32], index: 5, kind: input, shape index: {}]   ;;  %s736_s6 = inlined_call_operand.vmem [shape: f32[1,32], index: 6, kind: input, shape index: {}]   ;;  %s737_s7 = inlined_call_operand.vmem [shape: f32[32,8], index: 7, kind: input, shape index: {}]   ;;  %s738_s8 = inlined_call_operand.vmem [shape: f32[1,8], index: 8, kind: input, shape index: {}]   ;;  %s739_s9 = inlined_call_operand.hbm [shape: f32[1,8], index: 9, kind: output, shape index: {}]  }
   0x1   :  { %v45_v0 = vld [vmem:[%s733_s3] sm:$0xff]  ;;  %v46_v1 = vld [vmem:[%s733_s3 + $0x8] sm:$0xff]  ;;  %v47_v2 = vld [vmem:[%s733_s3 + $0x10] sm:$0xff] }
   0x2   :  { %v519_v3 = vpack.c.bf16 %v46_v1, %v45_v0  ;;  %v48_v4 = vld [vmem:[%s733_s3 + $0x18] sm:$0xff]  ;;  %v43_v5 = vld [vmem:[%s731_s1] sm:$0xff]  ;;  %v42_v8 = vld [vmem:[%s732_s2 + $0x8] sm:$0xff] }
   0x3   :  { %v523_v6 = vpack.c.bf16 %v48_v4, %v47_v2  ;;  %479 = vmatprep.mubr.msk.f32.mxu0 %vm49_vm0, %v43_v5  ;;  %v41_v7 = vld [vmem:[%s732_s2] sm:$0xff]  ;;  %v225_v10 = vld [vmem:[%s735_s5 + $0x8] sm:$0xff]  ;;  %v226_v12 = vld [vmem:[%s735_s5 + $0x10] sm:$0xff] }
   0x4   :  { %520 = vmatprep.subr.bf16.mxu0 %v519_v3  ;;  %v224_v9 = vld [vmem:[%s735_s5] sm:$0xff]  ;;  %v227_v13 = vld [vmem:[%s735_s5 + $0x18] sm:$0xff]  ;;  %v527_v14 = vpack.c.bf16 %v42_v8, %v41_v7 }
   0x5   :  { %522 = vmatpush3.bf16.msra.mxu0 %v519_v3  ;;  %v531_v11 = vpack.c.bf16 %v225_v10, %v224_v9  ;;  %v535_v15 = vpack.c.bf16 %v227_v13, %v226_v12 }
   0x6   :  { %524 = vmatprep.subr.bf16.mxu0 %v523_v6 }
   0x7   :  { %14 = vsyncpa [#allocation4], 0  ;;  %532 = vmatprep.subr.bf16.mxu1 %v531_v11  ;;  %v228_v16 = vld [vmem:[%s735_s5 + $0x20] sm:$0xff]  ;;  %v229_v17 = vld [vmem:[%s735_s5 + $0x28] sm:$0xff]  ;;  %vm131_vm1 = vcmask 130048   ;;  %vm239_vm2 = vcmask 523264  }
   0x8   :  { %534 = vmatpush3.bf16.msra.mxu1 %v531_v11  ;;  %v44_v18 = vld [vmem:[%s731_s1 + $0x8] sm:$0x3]  ;;  %v39_v19 = vld [vmem:[%s730_s0] sm:$0xff]  ;;  %v539_v20 = vpack.c.bf16 %v229_v17, %v228_v16  ;;  %v230_v22 = vld [vmem:[%s735_s5 + $0x30] sm:$0xff]  ;;  %vm37_vm3 = vcmask 253952   ;;  %v583_v32 = vmov 0.0  }
   0x9   :  { %526 = vmatpush3.bf16.msra.mxu0 %v523_v6  ;;  %536 = vmatprep.subr.bf16.mxu1 %v535_v15  ;;  %v40_v21 = vld [vmem:[%s730_s0 + $0x8] sm:$0x3]  ;;  %v231_v23 = vld [vmem:[%s735_s5 + $0x38] sm:$0xff]  ;;  %v441_v25 = vld [vmem:[%s734_s4] ss:$0 sm:$0xff]  ;;  %v584_v36 = vmov 0.0|0.0  }
   0xa   :  { %528 = vmatprep.subr.bf16.mxu0 %v527_v14  ;;  %v543_v24 = vpack.c.bf16 %v231_v23, %v230_v22  ;;  %38 = vst.msk [vmem:[#allocation2] sm:$0x1] %vm37_vm3, %v583_v32  ;;  %v343_v33 = vld [vmem:[%s737_s7] sm:$0xff]  ;;  %v344_v34 = vld [vmem:[%s737_s7 + $0x8] sm:$0xff]  ;;  %v345_v35 = vld [vmem:[%s737_s7 + $0x10] sm:$0xff]  ;;  %vm585_vm4 = vmmov 0  }
   0xb   :  { %v548_v37 = vpack.c.bf16 %v344_v34, %v343_v33  ;;  %v346_v38 = vld [vmem:[%s737_s7 + $0x18] sm:$0xff]  ;;  %v442_v40 = vld [vmem:[%s736_s6] ss:$0 sm:$0xff]  ;;  %vm325_vm5 = vcmask 254976   ;;  %s586_s29 = smov [#allocation3]   ;;  %vm421_vm6 = vcmask 57344  }
   0xc   :  { %480 = vmatmul.mubr.msk.f32.vlgmr.msra.gmra.mrb[0].mxu0 %vm49_vm0, %v44_v18  ;;  %538 = vmatpush3.bf16.msra.mxu1 %v535_v15  ;;  %v551_v39 = vpack.c.bf16 %v346_v38, %v345_v35  ;;  %v347_v60 = vld [vmem:[%s738_s8] sm:$0x1]  ;;  %s429_s2 = sshll.u32 %s586_s29, 4  ;;  %s430_s2 = int_to_ptr.vmem [resolvable:$true] %s429_s2 }
   0xd   :  { %530 = vmatpush3.bf16.msra.mxu0 %v527_v14  ;;  %486 = vmatprep.mubr.msk.f32.mxu0 %vm131_vm1, %v39_v19  ;;  %s559_s30 = scalar_lea.vmem %s430_s2, 16  ;;  %s563_s10 = scalar_lea.vmem %s430_s2, 32 }
   0xe   :  { %540 = vmatprep.subr.bf16.mxu1 %v539_v20  ;;  %547 = vmatprep.subr.bf16.mxu0 %v584_v36  ;;  %p560_p0 = scmp.ne.s32.totalorder %s430_s2, %s559_s30  ;;  %p564_p1 = scmp.lt.s32.totalorder %s430_s2, %s430_s2 }
   0xf   :  { %p565_p2 = scmp.lt.s32.totalorder %s563_s10, %s559_s30 }
  0x10   :  { %542 = vmatpush3.bf16.msra.mxu1 %v539_v20 }
  0x11   :  { %544 = vmatprep.subr.bf16.mxu1 %v543_v24  ;;  %v323_v55 = vld [vmem:[#allocation2] sm:$0x1]  ;;  %p566_p3 = por %p565_p2, %p564_p1 }
  0x13   :  { %p567_p4 = pnand %p566_p3, %p560_p0 }
  0x14   :  { %487 = vmatmul.mubr.msk.f32.vlgmr.msra.gmra.mrb[0].mxu0 %vm131_vm1, %v40_v21  ;;  %546 = vmatpush3.bf16.msra.mxu1 %v543_v24 }
  0x15   :  { %549 = vmatpush3.bf16.msra.mxu0 %v548_v37  ;;  %516 = vmatprep.mubr.msk.f32.mxu0 %vm585_vm4, %v583_v32 }
  0x16   :  { %550 = vmatprep.subr.bf16.mxu0 %v584_v36 }
  0x19   :  { %552 = vmatpush3.bf16.msra.mxu0 %v551_v39 }
  0xe7   :  { %v488_v26 = vpop.f32.mrb[0].mxu0 }
  0xe8   :  { %v221_v27 = vadd.f32 %v488_v26, %v441_v25  ;;  %v204_v28 = vpop.f32.mrb[1].mxu0 }
  0xe9   :  { %v220_v29 = vadd.f32 %v441_v25, %v204_v28 }
  0xea   :  { %v223_v31 = vmax.f32 %v221_v27, 0.0 }
  0xeb   :  { %v222_v30 = vmax.f32 %v220_v29, 0.0 }
  0xed   :  { %505 = vmatprep.mubr.msk.f32.mxu1 %vm239_vm2, %v222_v30 }
  0xee   :  { %506 = vmatmul.mubr.msk.f32.vlgmr.msra.gmra.mrb[0].mxu1 %vm239_vm2, %v223_v31 }
 0x1c1   :  { %v507_v41 = vpop.f32.mrb[0].mxu1 }
 0x1c2   :  { %v318_v42 = vadd.f32 %v507_v41, %v442_v40  ;;  %v312_v43 = vpop.f32.mrb[1].mxu1 }
 0x1c3   :  { %v313_v44 = vadd.f32 %v442_v40, %v312_v43 }
 0x1c4   :  { %v322_v45 = vmax.f32 %v318_v42, 0.0 }
 0x1c5   :  { %v321_v46 = vmax.f32 %v313_v44, 0.0 }
 0x1c6   :  { %v326_v47 = vsel %vm325_vm5, %v322_v45, 0.0 }
 0x1c7   :  { %v324_v48 = vsel %vm49_vm0, %v321_v46, 0.0 }
 0x1c8   :  { %v327_v49 = vadd.f32 %v326_v47, %v324_v48 }
 0x1ca   :  { %v328_v50 = vrot.slane %v327_v49, 4 }
 0x1cc   :  { %v329_v51 = vadd.f32 %v328_v50, %v327_v49 }
 0x1ce   :  { %v330_v52 = vrot.slane %v329_v51, 2 }
 0x1d0   :  { %v331_v53 = vadd.f32 %v330_v52, %v329_v51 }
 0x1d2   :  { %v332_v54 = vrot.slane %v331_v53, 1 }
 0x1d4   :  { %v333_v56 = vadd.f32 %v332_v54, %v331_v53 }
 0x1d6   :  { %v334_v57 = vadd.f32 %v333_v56, %v323_v55 }
 0x1d8   :  { %336 = vst.msk [vmem:[#allocation2] sm:$0x1] %vm37_vm3, %v334_v57 }
 0x1df   :  { %v340_v58 = vld [vmem:[#allocation2] sm:$0x1] }
 0x1e0   :  { %v342_v59 = vmul.f32 0.1, %v340_v58 }
 0x1e2   :  { %517 = vmatmul.mubr.msk.f32.vlgmr.msra.gmra.mrb[2].mxu0 %vm49_vm0, %v342_v59 }
 0x2b5   :  { %v417_v61 = vpop.f32.mrb[2].mxu0 }
 0x2b6   :  { %v418_v62 = vadd.f32 %v417_v61, %v347_v60  ;;  %v518_v63 = vpop.f32.mrb[3].mxu0 }
 0x2b8   :  { %422 = vst.msk [vmem:[#allocation3] sm:$0x1] %vm421_vm6, %v418_v62 }
 0x2b9   :  { %570 = shalt.err (!%p567_p4)
}
 0x2ba   :  { %s571_s8 = scalar_lea.hbm %s739_s9, 16 }
 0x2bb   :  { %p572_p5 = scmp.ne.s32.totalorder %s739_s9, %s571_s8  ;;  %p575_p6 = scmp.lt.u32.totalorder %s571_s8, %s739_s9 }
 0x2bd   :  { %p577_p7 = pnand %p575_p6, %p572_p5 }
 0x2bf   :  { %580 = shalt.err (!%p577_p7)
}
 0x2c0   :  { %432 = dma.vmem_to_hbm [thread:$0]  %s430_s2, 16, %s739_s9, [#allocation4]  }
 0x2c1   :  { %581 = dma.done.wait [#allocation4], 16  }
 0x2c2   :  { %582 = vsyncadd [#allocation4], 4294967280 }
 0x2c3   :  { %436 = vsyncpa [#allocation4], 1 }

</bundles_post_ra>
